<compile_context>
chip_gen: v6e
topology: v6e:2x2x1
jax: 0.10.0
libtpu: 0.0.40
codegen_flags: <defaults>
</compile_context>

<pallas_src>
import math
from functools import partial

import jax
import jax.numpy as jnp
from jax.experimental import pallas as pl
from jax.experimental.pallas import tpu as pltpu

LANES = 128
SUBLANES = 8
MAX_TILE_ROWS = 8192     # 4 MiB per f32 stream per tile
CHUNK_ROWS = 512         # in-kernel reduction chunk (256 KiB f32 temporaries)
NEG_INF = -1e30


def _fused_ssl_loss_kernel(p_ref, t_ref, m_ref,      # tiled (tile_rows, 128)
                           logits_ref,                # resident (B, P_pad) f32
                           tgt_ref,                   # resident (B, 1) int32
                           out_ref,                   # SMEM (3,): total, rec, perm
                           acc_ref, cnt_ref,          # VMEM (8,128) f32 scratch
                           *, batch, lam, rec_scale,
                           total_rows, tile_rows, chunk_rows, needs_tail_mask):
    i = pl.program_id(0)
    nsteps = pl.num_programs(0)

    @pl.when(i == 0)
    def _init():
        acc_ref[...] = jnp.zeros_like(acc_ref)
        cnt_ref[...] = jnp.zeros_like(cnt_ref)

    # ---- masked-MSE partial sums for this tile ------------------------------
    # fori_loop over small chunks keeps VMEM temporaries tiny and accumulates
    # straight into the (8,128) scratch (single cross-lane reduce in finalize).
    n_chunks = tile_rows // chunk_rows
    tile_row0 = i * tile_rows

    def chunk_body(c, carry):
        r0 = pl.multiple_of(c * chunk_rows, SUBLANES)
        p = p_ref[pl.ds(r0, chunk_rows), :].astype(jnp.float32)
        t = t_ref[pl.ds(r0, chunk_rows), :].astype(jnp.float32)
        sel = m_ref[pl.ds(r0, chunk_rows), :] == 0        # 0 = selected position
        if needs_tail_mask:
            # Partial last block: rows beyond the real array are undefined, so
            # they must be excluded with a select (never multiply-by-0).
            row_ids = jax.lax.broadcasted_iota(jnp.int32, (chunk_rows, LANES), 0)
            sel = sel & ((tile_row0 + r0 + row_ids) < total_rows)
        d = p - t
        sq = jnp.where(sel, d * d, 0.0)
        sel_f = sel.astype(jnp.float32)
        # (chunk,128) -> (8,128) fold: pure elementwise vreg adds, keeps the
        # single cross-lane/sublane reduction for the finalize step.
        acc_ref[...] += sq.reshape(chunk_rows // SUBLANES, SUBLANES, LANES).sum(axis=0)
        cnt_ref[...] += sel_f.reshape(chunk_rows // SUBLANES, SUBLANES, LANES).sum(axis=0)
        return carry

    jax.lax.fori_loop(0, n_chunks, chunk_body, 0)

    # ---- finalize: full reduce + fused cross-entropy + weighted combine -----
    @pl.when(i == nsteps - 1)
    def _finalize():
        sq_sum = jnp.sum(acc_ref[...])
        cnt = jnp.sum(cnt_ref[...])
        rec_loss = (sq_sum / cnt) * jnp.float32(rec_scale)   # NaN if cnt==0 (matches torch)

        logits = logits_ref[...].astype(jnp.float32)          # (B, P_pad), pads = -1e30
        row_max = jnp.max(logits, axis=-1, keepdims=True)
        lse = jnp.log(jnp.sum(jnp.exp(logits - row_max), axis=-1,
                              keepdims=True)) + row_max       # (B, 1)
        col_ids = jax.lax.broadcasted_iota(jnp.int32, logits.shape, 1)
        tgt = tgt_ref[...]                                     # (B, 1) int32
        tgt_logit = jnp.sum(jnp.where(col_ids == tgt, logits, 0.0),
                            axis=-1, keepdims=True)            # (B, 1)
        perm_loss = jnp.sum(lse - tgt_logit) / jnp.float32(batch)

        total = rec_loss + jnp.float32(lam) * perm_loss
        out_ref[0] = total
        out_ref[1] = rec_loss
        out_ref[2] = perm_loss


@partial(jax.jit, static_argnames=("lambda_perm", "rec_loss_scale"))
def combined_ssl_loss(rec_pred, original_x, mask, perm_logits, perm_targets,
                      lambda_perm=0.5, rec_loss_scale=1e-5):
    # ---- copy-free lane-dense slab view of the reconstruction tensors -------
    n = rec_pred.size
    if n % LANES == 0 and n >= SUBLANES * LANES:
        rows = n // LANES
        pad_elems = 0
    else:
        # TODO(synk): element counts not a multiple of 128 (or tiny inputs)
        #             fall back to a pad copy; the main path is copy-free.
        rows = max(SUBLANES, -(-n // LANES))
        rows = -(-rows // SUBLANES) * SUBLANES
        pad_elems = rows * LANES - n

    def as_slab(x, fill):
        flat = jnp.ravel(x)
        if pad_elems:
            flat = jnp.concatenate(
                [flat, jnp.full((pad_elems,), fill, flat.dtype)])
        return flat.reshape(rows, LANES)

    p2 = as_slab(rec_pred, 0)        # dtype preserved (bf16 inputs stay bf16)
    t2 = as_slab(original_x, 0)
    m2 = as_slab(mask, 1)            # pad=1 (unselected); ==0 compared in-kernel

    # ---- tile / chunk selection (all static) --------------------------------
    if rows >= MAX_TILE_ROWS:
        tile_rows, chunk_rows = MAX_TILE_ROWS, CHUNK_ROWS
    elif rows >= CHUNK_ROWS:
        tile_rows = (rows // CHUNK_ROWS) * CHUNK_ROWS
        chunk_rows = CHUNK_ROWS
    else:
        tile_rows = (rows // SUBLANES) * SUBLANES
        chunk_rows = tile_rows
    num_tiles = -(-rows // tile_rows)
    needs_tail_mask = (rows % tile_rows) != 0

    # ---- permutation logits / targets ----------------------------------------
    B, P = perm_logits.shape
    p_pad_cols = -(-P // LANES) * LANES
    logits_p = jnp.pad(perm_logits.astype(jnp.float32),
                       ((0, 0), (0, p_pad_cols - P)),
                       constant_values=NEG_INF)
    tgt2 = perm_targets.astype(jnp.int32).reshape(B, 1)

    kernel = partial(_fused_ssl_loss_kernel, batch=B,
                     lam=float(lambda_perm), rec_scale=float(rec_loss_scale),
                     total_rows=rows, tile_rows=tile_rows,
                     chunk_rows=chunk_rows, needs_tail_mask=needs_tail_mask)

    out = pl.pallas_call(
        kernel,
        out_shape=jax.ShapeDtypeStruct((3,), jnp.float32),
        grid_spec=pltpu.PrefetchScalarGridSpec(
            num_scalar_prefetch=0,
            grid=(num_tiles,),
            in_specs=[
                pl.BlockSpec((tile_rows, LANES), lambda i: (i, 0)),
                pl.BlockSpec((tile_rows, LANES), lambda i: (i, 0)),
                pl.BlockSpec((tile_rows, LANES), lambda i: (i, 0)),
                pl.BlockSpec((B, p_pad_cols), lambda i: (0, 0)),   # resident
                pl.BlockSpec((B, 1), lambda i: (0, 0)),            # resident
            ],
            out_specs=pl.BlockSpec(memory_space=pltpu.SMEM),
            scratch_shapes=[pltpu.VMEM((SUBLANES, LANES), jnp.float32),
                            pltpu.VMEM((SUBLANES, LANES), jnp.float32)],
        ),
        compiler_params=pltpu.CompilerParams(
            dimension_semantics=("arbitrary",),
            vmem_limit_bytes=48 * 1024 * 1024),
    )(p2, t2, m2, logits_p, tgt2)

    total, rec_loss, perm_loss = out[0], out[1], out[2]
    losses = {"rec_loss": rec_loss, "perm_loss": perm_loss, "total": total}
    return total, losses


if __name__ == "__main__":
    key = jax.random.PRNGKey(0)
    k1, k2, k3, k4, k5 = jax.random.split(key, 5)

    # Reconstruction branch: NCHW [B, C, H, W]
    B, C, H, W = 2, 4, 16, 16
    rec_pred = jax.random.normal(k1, (B, C, H, W), dtype=jnp.float32)
    original_x = jax.random.normal(k2, (B, C, H, W), dtype=jnp.float32)
    mask = (jax.random.uniform(k3, (B, C, H, W)) > 0.5).astype(jnp.float32)

    # Permutation branch: num_segments = 4 -> factorial(4) = 24 classes
    num_segments = 4
    P = math.factorial(num_segments)
    perm_logits = jax.random.normal(k4, (B, P), dtype=jnp.float32)
    perm_targets = jax.random.randint(k5, (B,), 0, P, dtype=jnp.int32)

    total, losses = combined_ssl_loss(rec_pred, original_x, mask,
                                      perm_logits, perm_targets)
    jax.block_until_ready(total)
    jax.block_until_ready(losses)

    # Pure-JAX reference check (same semantics as the PyTorch module).
    sel = mask == 0
    d = rec_pred - original_x
    rec_ref = (jnp.sum(jnp.where(sel, d * d, 0.0)) /
               jnp.sum(sel.astype(jnp.float32))) * 1e-5
    lse_ref = jax.scipy.special.logsumexp(perm_logits, axis=-1)
    perm_ref = jnp.mean(lse_ref - perm_logits[jnp.arange(B), perm_targets])
    total_ref = rec_ref + 0.5 * perm_ref
    assert jnp.allclose(total, total_ref, rtol=2e-4, atol=1e-6), (total, total_ref)
    assert jnp.allclose(losses["rec_loss"], rec_ref, rtol=2e-4, atol=1e-7)
    assert jnp.allclose(losses["perm_loss"], perm_ref, rtol=2e-4, atol=1e-6)

    print("KERNEL_OK")
</pallas_src>

<mosaic_0001>
module attributes {stable_mosaic.version = 11 : i64} {
  func.func @_fused_ssl_loss_kernel(%arg0: i32, %arg1: memref<16x128xf32, #tpu.memory_space<vmem>>, %arg2: memref<16x128xf32, #tpu.memory_space<vmem>>, %arg3: memref<16x128xf32, #tpu.memory_space<vmem>>, %arg4: memref<2x128xf32, #tpu.memory_space<vmem>>, %arg5: memref<2x1xi32, #tpu.memory_space<vmem>>, %arg6: memref<3xf32, #tpu.memory_space<smem>>, %arg7: memref<8x128xf32, #tpu.memory_space<vmem>>, %arg8: memref<8x128xf32, #tpu.memory_space<vmem>>) attributes {dimension_semantics = [#tpu.dimension_semantics<arbitrary>], iteration_bounds = array<i64: 1>, scalar_prefetch = 0 : i64, scratch_operands = 2 : i64, tpu.core_type = #tpu.core_type<tc>, window_params = [{transform_indices = @transform_0, window_bounds = array<i64: 16, 128>}, {transform_indices = @transform_1, window_bounds = array<i64: 16, 128>}, {transform_indices = @transform_2, window_bounds = array<i64: 16, 128>}, {pipeline_mode = #tpu.pipeline_mode<synchronous>, transform_indices = @transform_3, window_bounds = array<i64: 2, 128>}, {pipeline_mode = #tpu.pipeline_mode<synchronous>, transform_indices = @transform_4, window_bounds = array<i64: 2, 1>}, {transform_indices = @transform_5, window_bounds = array<i64: 3>}]} {
    %c0_i32 = arith.constant 0 : i32
    %0 = arith.cmpi eq, %arg0, %c0_i32 : i32
    %1 = arith.extui %0 : i1 to i32
    %c0_i32_0 = arith.constant 0 : i32
    %2 = arith.cmpi ne, %1, %c0_i32_0 : i32
    scf.if %2 {
      %cst_17 = arith.constant 0.000000e+00 : f32
      %32 = vector.broadcast %cst_17 : f32 to vector<8x128xf32>
      %c0_18 = arith.constant 0 : index
      %c0_19 = arith.constant 0 : index
      %33 = vector.load %arg7[%c0_18, %c0_19] : memref<8x128xf32, #tpu.memory_space<vmem>>, vector<8x128xf32>
      tpu.vector_store %arg7[%c0_18, %c0_19], %32 {strides = array<i32>} : memref<8x128xf32, #tpu.memory_space<vmem>>, vector<8x128xf32>,
      %cst_20 = arith.constant 0.000000e+00 : f32
      %34 = vector.broadcast %cst_20 : f32 to vector<8x128xf32>
      %c0_21 = arith.constant 0 : index
      %c0_22 = arith.constant 0 : index
      %35 = vector.load %arg8[%c0_21, %c0_22] : memref<8x128xf32, #tpu.memory_space<vmem>>, vector<8x128xf32>
      tpu.vector_store %arg8[%c0_21, %c0_22], %34 {strides = array<i32>} : memref<8x128xf32, #tpu.memory_space<vmem>>, vector<8x128xf32>,
    } else {
    }
    %c0_i32_1 = arith.constant 0 : i32
    %c16_i32 = arith.constant 16 : i32
    %3 = arith.muli %c0_i32_1, %c16_i32 : i32
    %4 = tpu.assume_multiple %3, 8 : i32
    %5 = arith.index_cast %4 : i32 to index
    %c0 = arith.constant 0 : index
    %6 = vector.load %arg1[%5, %c0] : memref<16x128xf32, #tpu.memory_space<vmem>>, vector<16x128xf32>
    %7 = arith.index_cast %4 : i32 to index
    %c0_2 = arith.constant 0 : index
    %8 = vector.load %arg2[%7, %c0_2] : memref<16x128xf32, #tpu.memory_space<vmem>>, vector<16x128xf32>
    %9 = arith.index_cast %4 : i32 to index
    %c0_3 = arith.constant 0 : index
    %10 = vector.load %arg3[%9, %c0_3] : memref<16x128xf32, #tpu.memory_space<vmem>>, vector<16x128xf32>
    %cst = arith.constant 0.000000e+00 : f32
    %11 = vector.broadcast %cst : f32 to vector<16x128xf32>
    %12 = arith.cmpf oeq, %10, %11 : vector<16x128xf32>
    %13 = arith.subf %6, %8 : vector<16x128xf32>
    %14 = arith.mulf %13, %13 : vector<16x128xf32>
    %cst_4 = arith.constant 0.000000e+00 : f32
    %15 = vector.broadcast %cst_4 : f32 to vector<16x128xf32>
    %16 = arith.select %12, %14, %15 : vector<16x128xi1>, vector<16x128xf32>
    %17 = arith.extui %12 : vector<16x128xi1> to vector<16x128xi32>
    %18 = arith.sitofp %17 : vector<16x128xi32> to vector<16x128xf32>
    %c0_5 = arith.constant 0 : index
    %c0_6 = arith.constant 0 : index
    %19 = vector.load %arg7[%c0_5, %c0_6] : memref<8x128xf32, #tpu.memory_space<vmem>>, vector<8x128xf32>
    %20 = vector.shape_cast %16 : vector<16x128xf32> to vector<2x8x128xf32>
    %cst_7 = arith.constant dense<0.000000e+00> : vector<8x128xf32>
    %21 = vector.multi_reduction <add>, %20, %cst_7 [0] : vector<2x8x128xf32> to vector<8x128xf32>
    %22 = arith.addf %19, %21 : vector<8x128xf32>
    %c0_8 = arith.constant 0 : index
    %c0_9 = arith.constant 0 : index
    %23 = vector.load %arg7[%c0_8, %c0_9] : memref<8x128xf32, #tpu.memory_space<vmem>>, vector<8x128xf32>
    tpu.vector_store %arg7[%c0_8, %c0_9], %22 {strides = array<i32>} : memref<8x128xf32, #tpu.memory_space<vmem>>, vector<8x128xf32>,
    %c0_10 = arith.constant 0 : index
    %c0_11 = arith.constant 0 : index
    %24 = vector.load %arg8[%c0_10, %c0_11] : memref<8x128xf32, #tpu.memory_space<vmem>>, vector<8x128xf32>
    %25 = vector.shape_cast %18 : vector<16x128xf32> to vector<2x8x128xf32>
    %cst_12 = arith.constant dense<0.000000e+00> : vector<8x128xf32>
    %26 = vector.multi_reduction <add>, %25, %cst_12 [0] : vector<2x8x128xf32> to vector<8x128xf32>
    %27 = arith.addf %24, %26 : vector<8x128xf32>
    %c0_13 = arith.constant 0 : index
    %c0_14 = arith.constant 0 : index
    %28 = vector.load %arg8[%c0_13, %c0_14] : memref<8x128xf32, #tpu.memory_space<vmem>>, vector<8x128xf32>
    tpu.vector_store %arg8[%c0_13, %c0_14], %27 {strides = array<i32>} : memref<8x128xf32, #tpu.memory_space<vmem>>, vector<8x128xf32>,
    %c1_i32 = arith.constant 1 : i32
    %c0_i32_15 = arith.constant 0 : i32
    %29 = arith.cmpi eq, %arg0, %c0_i32_15 : i32
    %30 = arith.extui %29 : i1 to i32
    %c0_i32_16 = arith.constant 0 : i32
    %31 = arith.cmpi ne, %30, %c0_i32_16 : i32
    scf.if %31 {
      %c0_17 = arith.constant 0 : index
      %c0_18 = arith.constant 0 : index
      %32 = vector.load %arg7[%c0_17, %c0_18] : memref<8x128xf32, #tpu.memory_space<vmem>>, vector<8x128xf32>
      %33 = vector.shape_cast %32 : vector<8x128xf32> to vector<1x8x128xf32>
      %cst_19 = arith.constant dense<0.000000e+00> : vector<1xf32>
      %34 = vector.multi_reduction <add>, %33, %cst_19 [1, 2] : vector<1x8x128xf32> to vector<1xf32>
      %35 = vector.shape_cast %34 : vector<1xf32> to vector<1x1x1xf32>
      %36 = vector.extract %35[0, 0, 0] : f32 from vector<1x1x1xf32>
      %c0_20 = arith.constant 0 : index
      %c0_21 = arith.constant 0 : index
      %37 = vector.load %arg8[%c0_20, %c0_21] : memref<8x128xf32, #tpu.memory_space<vmem>>, vector<8x128xf32>
      %38 = vector.shape_cast %37 : vector<8x128xf32> to vector<1x8x128xf32>
      %cst_22 = arith.constant dense<0.000000e+00> : vector<1xf32>
      %39 = vector.multi_reduction <add>, %38, %cst_22 [1, 2] : vector<1x8x128xf32> to vector<1xf32>
      %40 = vector.shape_cast %39 : vector<1xf32> to vector<1x1x1xf32>
      %41 = vector.extract %40[0, 0, 0] : f32 from vector<1x1x1xf32>
      %42 = arith.divf %36, %41 : f32
      %cst_23 = arith.constant 9.99999974E-6 : f32
      %43 = arith.mulf %42, %cst_23 : f32
      %c0_24 = arith.constant 0 : index
      %c0_25 = arith.constant 0 : index
      %44 = vector.load %arg4[%c0_24, %c0_25] : memref<2x128xf32, #tpu.memory_space<vmem>>, vector<2x128xf32>
      %cst_26 = arith.constant dense<0xFF800000> : vector<2xf32>
      %45 = vector.multi_reduction <maximumf>, %44, %cst_26 [1] : vector<2x128xf32> to vector<2xf32>
      %46 = vector.shape_cast %45 : vector<2xf32> to vector<2x1xf32>
      %47 = vector.broadcast %46 : vector<2x1xf32> to vector<2x128xf32>
      %48 = arith.subf %44, %47 : vector<2x128xf32>
      %49 = math.exp %48 : vector<2x128xf32>
      %cst_27 = arith.constant dense<0.000000e+00> : vector<2xf32>
      %50 = vector.multi_reduction <add>, %49, %cst_27 [1] : vector<2x128xf32> to vector<2xf32>
      %51 = vector.shape_cast %50 : vector<2xf32> to vector<2x1xf32>
      %52 = math.log %51 : vector<2x1xf32>
      %53 = arith.addf %52, %46 : vector<2x1xf32>
      %54 = tpu.iota {dimensions = array<i32: 1>} : vector<2x128xi32>
      %c0_28 = arith.constant 0 : index
      %c0_29 = arith.constant 0 : index
      %55 = vector.load %arg5[%c0_28, %c0_29] : memref<2x1xi32, #tpu.memory_space<vmem>>, vector<2x1xi32>
      %56 = vector.broadcast %55 : vector<2x1xi32> to vector<2x128xi32>
      %57 = arith.cmpi eq, %54, %56 : vector<2x128xi32>
      %cst_30 = arith.constant 0.000000e+00 : f32
      %58 = vector.broadcast %cst_30 : f32 to vector<2x128xf32>
      %59 = arith.select %57, %44, %58 : vector<2x128xi1>, vector<2x128xf32>
      %cst_31 = arith.constant dense<0.000000e+00> : vector<2xf32>
      %60 = vector.multi_reduction <add>, %59, %cst_31 [1] : vector<2x128xf32> to vector<2xf32>
      %61 = vector.shape_cast %60 : vector<2xf32> to vector<2x1xf32>
      %62 = arith.subf %53, %61 : vector<2x1xf32>
      %63 = vector.shape_cast %62 : vector<2x1xf32> to vector<1x2x1xf32>
      %cst_32 = arith.constant dense<0.000000e+00> : vector<1xf32>
      %64 = vector.multi_reduction <add>, %63, %cst_32 [1, 2] : vector<1x2x1xf32> to vector<1xf32>
      %65 = vector.shape_cast %64 : vector<1xf32> to vector<1x1x1xf32>
      %66 = vector.extract %65[0, 0, 0] : f32 from vector<1x1x1xf32>
      %cst_33 = arith.constant 2.000000e+00 : f32
      %67 = arith.divf %66, %cst_33 : f32
      %cst_34 = arith.constant 5.000000e-01 : f32
      %68 = arith.mulf %cst_34, %67 : f32
      %69 = arith.addf %43, %68 : f32
      %c0_35 = arith.constant 0 : index
      %70 = memref.load %arg6[%c0_35] : memref<3xf32, #tpu.memory_space<smem>>
      memref.store %69, %arg6[%c0_35] : memref<3xf32, #tpu.memory_space<smem>>
      %c1 = arith.constant 1 : index
      %71 = memref.load %arg6[%c1] : memref<3xf32, #tpu.memory_space<smem>>
      memref.store %43, %arg6[%c1] : memref<3xf32, #tpu.memory_space<smem>>
      %c2 = arith.constant 2 : index
      %72 = memref.load %arg6[%c2] : memref<3xf32, #tpu.memory_space<smem>>
      memref.store %67, %arg6[%c2] : memref<3xf32, #tpu.memory_space<smem>>
    } else {
    }
    return
  }
  func.func @transform_0(%arg0: i32) -> (i32, i32) {
    %c0_i32 = arith.constant 0 : i32
    %c0_i32_0 = arith.constant 0 : i32
    return %arg0, %c0_i32 : i32, i32
  }
  func.func @transform_1(%arg0: i32) -> (i32, i32) {
    %c0_i32 = arith.constant 0 : i32
    %c0_i32_0 = arith.constant 0 : i32
    return %arg0, %c0_i32 : i32, i32
  }
  func.func @transform_2(%arg0: i32) -> (i32, i32) {
    %c0_i32 = arith.constant 0 : i32
    %c0_i32_0 = arith.constant 0 : i32
    return %arg0, %c0_i32 : i32, i32
  }
  func.func @transform_3(%arg0: i32) -> (i32, i32) {
    %c0_i32 = arith.constant 0 : i32
    %c0_i32_0 = arith.constant 0 : i32
    %c0_i32_1 = arith.constant 0 : i32
    return %c0_i32, %c0_i32_0 : i32, i32
  }
  func.func @transform_4(%arg0: i32) -> (i32, i32) {
    %c0_i32 = arith.constant 0 : i32
    %c0_i32_0 = arith.constant 0 : i32
    %c0_i32_1 = arith.constant 0 : i32
    return %c0_i32, %c0_i32_0 : i32, i32
  }
  func.func @transform_5(%arg0: i32) -> i32 {
    %c0_i32 = arith.constant 0 : i32
    %c0_i32_0 = arith.constant 0 : i32
    return %c0_i32 : i32
  }
}

</mosaic_0001>

<bundles_post_ra>
// kernel: combined_ssl_loss.1
= control target key start
LH: loop header
LB: loop body
LE: loop exit
PB: predicated region body
PF: predicated region fallthrough
CT: control target
= control target key end

     0   :  { %vm82_vm0 = vcmask 1041408   ;;  %v178_v2 = vmov 0   ;;  %s241_s0 = inlined_call_operand.vmem [shape: f32[16,128], index: 0, kind: input, shape index: {}]   ;;  %s242_s1 = inlined_call_operand.vmem [shape: f32[16,128], index: 1, kind: input, shape index: {}]   ;;  %s243_s2 = inlined_call_operand.vmem [shape: f32[16,128], index: 2, kind: input, shape index: {}]   ;;  %s244_s3 = inlined_call_operand.vmem [shape: f32[2,128], index: 3, kind: input, shape index: {}]   ;;  %s245_s4 = inlined_call_operand.vmem [shape: s32[2,1], index: 4, kind: input, shape index: {}]   ;;  %s246_s5 = inlined_call_operand.vmem [shape: f32[3], index: 5, kind: output, shape index: {}]  }
   0x1   :  { %v81_v0 = vld [vmem:[%s244_s3] sm:$0x3]  ;;  %157 = vset.pattern.permute.xlu0 %v178_v2 }
   0x2   :  { %v83_v1 = vsel %vm82_vm0, %v81_v0, -inf }
   0x3   :  { %10 = vsyncpa [#allocation5], 0  ;;  %84 = vmax.xlane.f32.xlu0 %v83_v1  ;;  %v97_v3 = vld [vmem:[%s245_s4] sm:$0x3]  ;;  %v95_v7 = vlaneseq  ;;  %v28_v9 = vld [vmem:[%s241_s0 + $0x8] sm:$0xff]  ;;  %v179_v27 = vmov 0.0  }
   0x4   :  { %v27_v8 = vld [vmem:[%s241_s0] sm:$0xff]  ;;  %v30_v11 = vld [vmem:[%s242_s1 + $0x8] sm:$0xff]  ;;  %vm107_vm4 = vcmask 1024   ;;  %s135_s13 = sshll.u32 %s246_s5, 4  ;;  %s136_s13 = int_to_ptr.vmem [resolvable:$true] %s135_s13 }
   0x5   :  { %v29_v10 = vld [vmem:[%s242_s1] sm:$0xff]  ;;  %v96_v12 = vand.u32 127, %v95_v7  ;;  %v36_v15 = vsub.f32 %v28_v9, %v30_v11  ;;  %v32_v17 = vld [vmem:[%s243_s2 + $0x8] sm:$0xff]  ;;  %s164_s16 = scalar_lea.vmem %s136_s13, 16  ;;  %p169_p1 = scmp.lt.s32.totalorder %s136_s13, %s136_s13 }
   0x6   :  { %v35_v14 = vsub.f32 %v27_v8, %v29_v10  ;;  %v31_v16 = vld [vmem:[%s243_s2] sm:$0xff]  ;;  %vm34_vm3 = vcmp.eq.f32.partialorder %v32_v17, 0.0  ;;  %p165_p0 = scmp.ne.s32.totalorder %s136_s13, %s164_s16  ;;  %p170_p2 = scmp.lt.s32.totalorder %s164_s16, %s164_s16 }
   0x7   :  { %v38_v19 = vmul.f32 %v36_v15, %v36_v15  ;;  %vm33_vm2 = vcmp.eq.f32.partialorder %v31_v16, 0.0  ;;  %v145_v29 = vsel %vm34_vm3, 1.0, %v179_v27 }
   0x8   :  { %v37_v18 = vmul.f32 %v35_v14, %v35_v14  ;;  %v144_v28 = vsel %vm33_vm2, 1.0, %v179_v27  ;;  %p171_p3 = por %p170_p2, %p169_p1 }
   0x9   :  { %v40_v25 = vsel %vm34_vm3, %v38_v19, 0.0  ;;  %v50_v30 = vadd.f32 %v145_v29, %v144_v28 }
   0xa   :  { %v39_v24 = vsel %vm33_vm2, %v37_v18, 0.0  ;;  %p172_p4 = pnand %p171_p3, %p165_p0 }
   0xb   :  { %v46_v26 = vadd.f32 %v40_v25, %v39_v24 }
  0x19   :  { %99 = vperm.xlu0 %157, %v97_v3  }
  0x8c   :  { %v85_v4 = vpop.xlane.xlu0 %84 }
  0x8d   :  { %v86_v5 = vsub.f32 %v81_v0, %v85_v4 }
  0x8f   :  { %v87_v6 = vmul.f32 1.442695, %v86_v5 }
  0x91   :  { %158 = vpow2.f32 %v87_v6 }
  0x94   :  { %v100_v13 = vpop.permute.xlu0 %99 }
  0x95   :  { %vm101_vm1 = vcmp.eq.s32.totalorder %v96_v12, %v100_v13 }
  0x96   :  { %v102_v21 = vsel %vm101_vm1, %v81_v0, 0.0 }
  0x97   :  { %v103_v23 = vsel %vm82_vm0, %v102_v21, 0.0 }
  0x9e   :  { %v159_v20 = vpop.eup %158 }
  0x9f   :  { %v89_v22 = vsel %vm82_vm0, %v159_v20, 0.0 }
  0xa0   :  { %90 = vadd.xlane.f32.xlu1 %v89_v22 }
  0xa4   :  { %104 = vadd.xlane.f32.xlu1 %v103_v23 }
  0xa8   :  { %57 = vadd.xlane.f32.xlu1 %v46_v26 }
  0xac   :  { %67 = vadd.xlane.f32.xlu1 %v50_v30 }
 0x129   :  { %v91_v31 = vpop.xlane.xlu1 %90 }
 0x12a   :  { %160 = vlog2.f32 %v91_v31 }
 0x12d   :  { %v105_v32 = vpop.xlane.xlu1 %104 }
 0x131   :  { %v58_v33 = vpop.xlane.xlu1 %57 }
 0x132   :  { %v59_v34 = vrot.slane %v58_v33, 4 }
 0x134   :  { %v60_v35 = vadd.f32 %v59_v34, %v58_v33 }
 0x135   :  { %v68_v36 = vpop.xlane.xlu1 %67 }
 0x136   :  { %v61_v37 = vrot.slane %v60_v35, 2  ;;  %v69_v38 = vrot.slane %v68_v36, 4 }
 0x137   :  { %v161_v39 = vpop.eup %160 }
 0x138   :  { %v93_v40 = vmul.f32 0.6931472, %v161_v39  ;;  %v70_v41 = vadd.f32 %v69_v38, %v68_v36  ;;  %v62_v42 = vadd.f32 %v61_v37, %v60_v35 }
 0x13a   :  { %v94_v43 = vadd.f32 %v93_v40, %v85_v4  ;;  %v71_v44 = vrot.slane %v70_v41, 2  ;;  %v63_v45 = vrot.slane %v62_v42, 1 }
 0x13c   :  { %v106_v46 = vsub.f32 %v94_v43, %v105_v32  ;;  %v64_v47 = vadd.f32 %v63_v45, %v62_v42  ;;  %v72_v48 = vadd.f32 %v71_v44, %v70_v41 }
 0x13e   :  { %v108_v49 = vsel %vm107_vm4, %v106_v46, 0.0  ;;  %146 = vpush %v64_v47  ;;  %v73_v50 = vrot.slane %v72_v48, 1 }
 0x13f   :  { %109 = vadd.xlane.f32.xlu1 %v108_v49 }
 0x140   :  { %v74_v51 = vadd.f32 %v73_v50, %v72_v48 }
 0x142   :  { %148 = vpush %v74_v51 }
 0x16f   :  { %s147_s0 = spop %146 }
 0x173   :  { %s149_s1 = spop %148 }
 0x174   :  { %v76_v52 = vstv %s149_s1 }
 0x175   :  { %162 = vrcp.f32 %v76_v52 }
 0x182   :  { %v163_v53 = vpop.eup %162 }
 0x183   :  { %150 = vpush %v163_v53 }
 0x1b4   :  { %s151_s2 = spop %150 }
 0x1b5   :  { %s79_s7 = smul.f32 %s151_s2, %s147_s0 }
 0x1b7   :  { %s80_s8 = smul.f32 1e-05, %s79_s7 }
 0x1b9   :  { %126 = sst [smem:[#allocation4 + $0x1]] %s80_s8 }
 0x1c8   :  { %v110_v54 = vpop.xlane.xlu1 %109 }
 0x1c9   :  { %v111_v55 = vrot.slane %v110_v54, 4 }
 0x1cb   :  { %v112_v56 = vadd.f32 %v111_v55, %v110_v54 }
 0x1cd   :  { %v113_v57 = vrot.slane %v112_v56, 2 }
 0x1cf   :  { %v114_v58 = vadd.f32 %v113_v57, %v112_v56 }
 0x1d1   :  { %v115_v59 = vrot.slane %v114_v58, 1 }
 0x1d3   :  { %v116_v60 = vadd.f32 %v115_v59, %v114_v58 }
 0x1d5   :  { %152 = vpush %v116_v60 }
 0x206   :  { %s153_s9 = spop %152 }
 0x207   :  { %s120_s10 = smul.f32 0.5, %s153_s9 }
 0x209   :  { %s121_s14 = smul.f32 0.5, %s120_s10  ;;  %128 = sst [smem:[#allocation4 + $0x2]] %s120_s10 }
 0x20b   :  { %s122_s15 = sadd.f32 %s121_s14, %s80_s8 }
 0x20d   :  { %124 = sst [smem:[#allocation4]] %s122_s15 }
 0x20e   :  { %175 = shalt.err (!%p172_p4)
}
 0x20f   :  { %s180_s17 = smov [#allocation4]  }
 0x210   :  { %138 = dma.smem_to_vmem %s180_s17, 16, %s136_s13, [#allocation5]  }
 0x211   :  { %176 = dma.done.wait [#allocation5], 16  }
 0x212   :  { %177 = vsyncadd [#allocation5], 4294967280 }
 0x213   :  { %142 = sfence }
 0x214   :  { %143 = vsyncpa [#allocation5], 1 }

</bundles_post_ra>
